<compile_context>
chip_gen: v7x
topology: tpu7x:2x2x1
jax: 0.10.0
libtpu: 0.0.40
codegen_flags: <defaults>
</compile_context>

<pallas_src>
import functools

import jax
import jax.numpy as jnp
import numpy as np
from jax.experimental import pallas as pl
from jax.experimental.pallas import tpu as pltpu


_LANES = 128                        # full lane width -> unmasked vst, lane-dense DMA
_BLOCK_BYTES = 2 * 1024 * 1024      # ~2 MiB row tiles: amortize per-step overhead;
                                    # in+out double-buffered = 8 MiB < 16 MiB (v5e
                                    # scoped default), far under v6e/v7x limits.
_GRID_THRESHOLD_BYTES = _BLOCK_BYTES  # <= this: single full-array VMEM block.


def _copy_kernel(x_ref, o_ref):
    # Pure pass-through of the current block (output HBM buffer aliases input).
    o_ref[...] = x_ref[...]


@functools.partial(jax.jit, donate_argnums=(0,))
def _copy_2d(x):
    """Identity copy of a lane-dense (rows, 128) slab via Pallas.

    The argument is donated so XLA honors input_output_aliases={0: 0}
    (no defensive copy of the input, no extra HBM result buffer).
    """
    rows, cols = x.shape
    itemsize = jnp.dtype(x.dtype).itemsize
    nbytes = rows * cols * itemsize

    if nbytes <= _GRID_THRESHOLD_BYTES:
        # Small obs: one full-array block in VMEM, no grid, zero per-step cost.
        return pl.pallas_call(
            _copy_kernel,
            out_shape=jax.ShapeDtypeStruct(x.shape, x.dtype),
            in_specs=[pl.BlockSpec(memory_space=pltpu.MemorySpace.VMEM)],
            out_specs=pl.BlockSpec(memory_space=pltpu.MemorySpace.VMEM),
            input_output_aliases={0: 0},
        )(x)

    # Large obs: pipelined ~2 MiB row tiles.  pl.cdiv handles non-divisible row
    # counts (partial last block is masked), so no whole-array-VMEM fallback
    # exists for any size.  Because the threshold equals the block size, the
    # grid always has >= 2 steps -> "parallel" shards across v7x's 2 TCs.
    block_rows = max(8, (_BLOCK_BYTES // (cols * itemsize)) // 8 * 8)
    grid = (pl.cdiv(rows, block_rows),)
    return pl.pallas_call(
        _copy_kernel,
        out_shape=jax.ShapeDtypeStruct(x.shape, x.dtype),
        grid=grid,
        in_specs=[pl.BlockSpec((block_rows, cols), lambda i: (i, 0))],
        out_specs=pl.BlockSpec((block_rows, cols), lambda i: (i, 0)),
        input_output_aliases={0: 0},
        compiler_params=pltpu.CompilerParams(
            dimension_semantics=("parallel",),
        ),
        cost_estimate=pl.CostEstimate(
            flops=0, transcendentals=0, bytes_accessed=2 * nbytes),
    )(x)


def obs_passthrough(obs):
    """Identity on obs.  Fastest path: no kernel at all (perf feedback #1)."""
    return obs


def obs_copy(obs):
    """Materialize a fresh copy of obs through the Pallas kernel (any shape)."""
    orig_shape = obs.shape
    n = obs.size
    pad = (-n) % _LANES
    flat = obs.reshape(-1)
    if pad:
        # TODO(synk): ragged sizes pay one pad copy to stay on the unmasked,
        # lane-dense, pipelined path (no vst.msk, no whole-array-VMEM branch).
        flat = jnp.pad(flat, (0, pad))
    x = flat.reshape(-1, _LANES)
    out = _copy_2d(x)
    out = out.reshape(-1)
    if pad:
        out = out[:n]
    return out.reshape(orig_shape)


class TorchModelPallas:
    """JAX/Pallas mirror of the (abstract) TorchModel."""

    def __init__(self, model_config=None):
        # Reference __init__ has no parameters; nothing to initialize.
        self._value = None

    def forward(self, obs, state=None, hidden=None):
        # Reference forward body is `pass` -> returns None (abstract base).
        # A concrete subclass would run its Pallas kernels here, e.g.
        # `return obs_copy(obs)` or simply `obs_passthrough(obs)`.
        return None

    def __call__(self, obs, state=None, hidden=None):
        return self.forward(obs, state, hidden)

    def get_vf(self):
        # Returns V(s_t) when a critic is used; None here, as in the reference.
        return self._value


if __name__ == "__main__":
    key = jax.random.PRNGKey(0)
    k1, k2 = jax.random.split(key)

    # Small [B x T x F] observation -> single full-array VMEM block path.
    B, T, F = 2, 8, 32
    obs = jax.random.normal(k1, (B, T, F), dtype=jnp.float32)
    expected = np.asarray(obs)  # host snapshot (kernel input buffer is donated)
    out = jax.block_until_ready(obs_copy(obs))
    assert out.shape == (B, T, F)
    assert np.allclose(np.asarray(out), expected), "small-path identity mismatch"

    # Medium ragged obs -> padded to lanes, cdiv-gridded ~2 MiB block path
    # (partial last block, >=2 parallel grid steps).
    big = jax.random.normal(k2, (2, 100, 3001), dtype=jnp.float32)
    expected_big = np.asarray(big)
    out_big = jax.block_until_ready(obs_copy(big))
    assert out_big.shape == big.shape
    assert np.allclose(np.asarray(out_big), expected_big), "gridded-path mismatch"

    # No-kernel fast path: identity means just hand the array back.
    assert obs_passthrough(out) is out

    # Module wrapper keeps reference-exact semantics (abstract base class).
    model = TorchModelPallas(model_config={})
    assert model(out) is None
    assert model.get_vf() is None

    print("KERNEL_OK")
</pallas_src>

<mosaic_0001>
module attributes {stable_mosaic.version = 11 : i64} {
  func.func @_copy_kernel(%arg0: memref<4x128xf32, #tpu.memory_space<vmem>>, %arg1: memref<4x128xf32, #tpu.memory_space<vmem>>) attributes {dimension_semantics = [], scalar_prefetch = 0 : i64, scratch_operands = 0 : i64, tpu.core_type = #tpu.core_type<tc>} {
    %c0 = arith.constant 0 : index
    %c0_0 = arith.constant 0 : index
    %0 = vector.load %arg0[%c0, %c0_0] : memref<4x128xf32, #tpu.memory_space<vmem>>, vector<4x128xf32>
    %c0_1 = arith.constant 0 : index
    %c0_2 = arith.constant 0 : index
    %1 = vector.load %arg1[%c0_1, %c0_2] : memref<4x128xf32, #tpu.memory_space<vmem>>, vector<4x128xf32>
    tpu.vector_store %arg1[%c0_1, %c0_2], %0 {strides = array<i32>} : memref<4x128xf32, #tpu.memory_space<vmem>>, vector<4x128xf32>,
    return
  }
}

</mosaic_0001>

<bundles_post_ra>
// kernel: _copy_2d.1
= control target key start
LH: loop header
LB: loop body
LE: loop exit
PB: predicated region body
PF: predicated region fallthrough
CT: control target
= control target key end

     0   :  { %6 = vsyncpa [#allocation3], 0  ;;  %s124_s0 = inlined_call_operand.hbm [shape: f32[4,128], index: 0, kind: input, shape index: {}, may-alias: {0,1}]   ;;  %s125_s1 = inlined_call_operand.hbm [shape: f32[4,128], index: 1, kind: output, shape index: {}, may-alias: {0,1}]  }
   0x1   :  { %7 = vsyncpa [#allocation4], 0  ;;  %s88_s6 = smov [#allocation2]   ;;  %s40_s10 = scalar_lea.hbm %s124_s0, 64 }
   0x2   :  { %s14_s7 = sshll.u32 %s88_s6, 4  ;;  %p41_p0 = scmp.ne.s32.totalorder %s124_s0, %s40_s10  ;;  %s15_s7 = int_to_ptr.vmem [resolvable:$true] %s14_s7 }
   0x3   :  { %p44_p1 = scmp.lt.u32.totalorder %s40_s10, %s124_s0 }
   0x5   :  { %p46_p2 = pnand %p44_p1, %p41_p0 }
   0x7   :  { %49 = shalt.err (!%p46_p2)
}
   0x8   :  { %s50_s15 = scalar_lea.vmem %s15_s7, 64  ;;  %p55_p4 = scmp.lt.s32.totalorder %s15_s7, %s15_s7 }
   0x9   :  { %p51_p3 = scmp.ne.s32.totalorder %s15_s7, %s50_s15  ;;  %p56_p5 = scmp.lt.s32.totalorder %s50_s15, %s50_s15 }
   0xb   :  { %p57_p6 = por %p56_p5, %p55_p4 }
   0xd   :  { %p58_p7 = pnand %p57_p6, %p51_p3 }
   0xf   :  { %61 = shalt.err (!%p58_p7)
}
  0x10   :  { %17 = dma.hbm_to_vmem [thread:$0]  %s124_s0, 64, %s15_s7, [#allocation3]  }
  0x11   :  { %84 = dma.done.wait [#allocation3], 64  }
  0x12   :  { %85 = vsyncadd [#allocation3], 4294967232  ;;  %s89_s18 = smov [#allocation5]   ;;  %v21_v0 = vld [vmem:[#allocation2] sm:$0xf] }
  0x13   :  { %s29_s19 = sshll.u32 %s89_s18, 4  ;;  %22 = vst [vmem:[#allocation5] sm:$0xf] %v21_v0  ;;  %s30_s19 = int_to_ptr.vmem [resolvable:$true] %s29_s19 }
  0x14   :  { %s62_s20 = scalar_lea.vmem %s30_s19, 64  ;;  %p67_p9 = scmp.lt.s32.totalorder %s30_s19, %s30_s19 }
  0x15   :  { %p63_p8 = scmp.ne.s32.totalorder %s30_s19, %s62_s20  ;;  %p68_p10 = scmp.lt.s32.totalorder %s62_s20, %s62_s20 }
  0x17   :  { %p69_p11 = por %p68_p10, %p67_p9 }
  0x19   :  { %p70_p12 = pnand %p69_p11, %p63_p8 }
  0x1b   :  { %73 = shalt.err (!%p70_p12)
}
  0x1c   :  { %s74_s23 = scalar_lea.hbm %s125_s1, 64 }
  0x1d   :  { %p75_p13 = scmp.ne.s32.totalorder %s125_s1, %s74_s23  ;;  %p78_p0 = scmp.lt.u32.totalorder %s74_s23, %s125_s1 }
  0x1f   :  { %p80_p1 = pnand %p78_p0, %p75_p13 }
  0x21   :  { %83 = shalt.err (!%p80_p1)
}
  0x22   :  { %32 = dma.vmem_to_hbm [thread:$0]  %s30_s19, 64, %s125_s1, [#allocation4]  }
  0x23   :  { %86 = dma.done.wait [#allocation4], 64  }
  0x24   :  { %87 = vsyncadd [#allocation4], 4294967232 }
  0x25   :  { %36 = vsyncpa [#allocation3], 1 }
  0x26   :  { %37 = vsyncpa [#allocation4], 1 }

</bundles_post_ra>
